<compile_context>
chip_gen: v7x
topology: tpu7x:2x2x1
jax: 0.10.0
libtpu: 0.0.40
codegen_flags: <defaults>
</compile_context>

<pallas_src>
import functools

import jax
import jax.numpy as jnp
from jax.experimental import pallas as pl
from jax.experimental.pallas import tpu as pltpu


def _round_up(x, m):
    return ((x + m - 1) // m) * m


def _cdiv(a, b):
    return -(-a // b)


def _vmem_capacity_bytes():
    """Best-effort physical VMEM capacity; conservative fallback if unknown."""
    try:
        info = pltpu.get_tpu_info()
        cap = getattr(info, "vmem_capacity_bytes", None)
        if cap:
            return int(cap)
    except Exception:
        pass
    return 64 * 1024 * 1024  # assume the smallest (v7x-sized) VMEM


# --------------------------------------------------------------------------
# Kernels
# --------------------------------------------------------------------------
def _ffn_stream_kernel(x_ref, w1_ref, b1_ref, w2_ref, b2_ref, o_ref, acc_ref):
    """Hidden dim streamed in th-sized slices; f32 accumulator over h steps."""
    # x_ref : (tm, E)   row tile (resident across h steps)
    # w1_ref: (E, th)   hidden slice of W1
    # b1_ref: (1, th)   f32
    # w2_ref: (th, E)   hidden slice of W2
    # b2_ref: (1, E)    f32
    # o_ref : (tm, E)
    # acc_ref: (tm, E)  f32 VMEM scratch
    h_idx = pl.program_id(1)

    @pl.when(h_idx == 0)
    def _():
        # Hoisted b2: seed the accumulator once per row tile.
        acc_ref[...] = jnp.broadcast_to(b2_ref[...], acc_ref.shape)

    hidden = jnp.dot(x_ref[...], w1_ref[...],
                     preferred_element_type=jnp.float32)
    hidden = jnp.maximum(hidden + b1_ref[...], 0.0)          # bias + ReLU in f32
    acc_ref[...] += jnp.dot(hidden.astype(w2_ref.dtype), w2_ref[...],
                            preferred_element_type=jnp.float32)

    @pl.when(h_idx == pl.num_programs(1) - 1)
    def _():
        o_ref[...] = acc_ref[...].astype(o_ref.dtype)


def _ffn_resident_kernel(x_ref, w1_ref, b1_ref, w2_ref, b2_ref, o_ref):
    """Weights fully VMEM-resident; no hidden grid axis, no accumulator."""
    hidden = jnp.dot(x_ref[...], w1_ref[...],
                     preferred_element_type=jnp.float32)
    hidden = jnp.maximum(hidden + b1_ref[...], 0.0)
    out = jnp.dot(hidden.astype(w2_ref.dtype), w2_ref[...],
                  preferred_element_type=jnp.float32)
    o_ref[...] = (out + b2_ref[...]).astype(o_ref.dtype)


# --------------------------------------------------------------------------
# Wrapper
# --------------------------------------------------------------------------
@functools.partial(
    jax.jit, static_argnames=("tm", "th", "compute_dtype", "weight_resident"))
def feed_forward_module(x, w1, b1, w2, b2, *, tm=None, th=None,
                        compute_dtype=jnp.bfloat16, weight_resident=None):
    """x: (B, S, E); w1: (E, H); b1: (H,); w2: (H, E); b2: (E,).

    Returns W2(relu(W1(x))) with the same leading shape and dtype as x.
    """
    B, S, E = x.shape
    H = w1.shape[1]
    M = B * S
    out_dtype = x.dtype

    # ---- per-generation defaults derived from VMEM capacity ----------------
    vmem_cap = _vmem_capacity_bytes()
    small_vmem = vmem_cap <= 64 * 1024 * 1024          # v7x-class
    vmem_limit = int(vmem_cap * 0.8)                   # headroom for compiler scratch
    if tm is None:
        tm = 512 if small_vmem else 768
    if th is None:
        th = 256 if small_vmem else 512
    th = _round_up(th, 128)

    itemsize = jnp.dtype(compute_dtype).itemsize
    out_itemsize = jnp.dtype(out_dtype).itemsize
    row_align = max(8, 32 // itemsize)                 # 8 f32, 16 bf16, 32 int8/fp8

    # ---- row tiling (token axis) -------------------------------------------
    tm_eff = min(tm, _round_up(M, row_align))
    # Guarantee >= 2 row tiles for moderately large M (megacore on v7x).
    if _cdiv(M, tm_eff) < 2 and M >= 512:
        tm_eff = _round_up(_cdiv(M, 2), row_align)
    Mp = _round_up(M, tm_eff)
    n_row_tiles = Mp // tm_eff

    # ---- hidden tiling / path selection ------------------------------------
    th_eff = min(th, _round_up(H, 128))
    Hp_res = _round_up(H, 128)
    # Resident-path budget: 2x weight buffers + per-row-tile x/out/hidden buffers.
    resident_bytes = (2 * (2 * E * Hp_res * itemsize)          # W1+W2, 2x buffered
                      + 2 * tm_eff * E * itemsize              # x double-buffer
                      + 2 * tm_eff * E * out_itemsize          # out double-buffer
                      + tm_eff * Hp_res * 4)                   # f32 hidden
    use_resident = resident_bytes <= (vmem_limit // 2)
    if weight_resident is not None:
        use_resident = bool(weight_resident)

    Hp = Hp_res if use_resident else _round_up(H, th_eff)

    # ---- cast + pad ---------------------------------------------------------
    x2d = x.reshape(M, E).astype(compute_dtype)
    w1c = w1.astype(compute_dtype)
    w2c = w2.astype(compute_dtype)
    b1f = b1.astype(jnp.float32)
    b2f = b2.astype(jnp.float32)

    if Mp != M:
        x2d = jnp.pad(x2d, ((0, Mp - M), (0, 0)))
    if Hp != H:
        # Zero padding on H is exact: relu(x@0 + 0) = 0, zero W2 rows add 0.
        w1c = jnp.pad(w1c, ((0, 0), (0, Hp - H)))
        b1f = jnp.pad(b1f, (0, Hp - H))
        w2c = jnp.pad(w2c, ((0, Hp - H), (0, 0)))

    b1_2d = b1f.reshape(1, Hp)
    b2_2d = b2f.reshape(1, E)

    flops = 4 * Mp * E * Hp  # two matmuls, 2 flops per MAC

    if use_resident:
        cost = pl.CostEstimate(
            flops=flops, transcendentals=0,
            bytes_accessed=(Mp * E * itemsize + Mp * E * out_itemsize
                            + 2 * E * Hp * itemsize))
        out2d = pl.pallas_call(
            _ffn_resident_kernel,
            out_shape=jax.ShapeDtypeStruct((Mp, E), out_dtype),
            grid_spec=pltpu.PrefetchScalarGridSpec(
                num_scalar_prefetch=0,
                grid=(n_row_tiles,),
                in_specs=[
                    pl.BlockSpec((tm_eff, E), lambda i: (i, 0)),   # x row tile
                    pl.BlockSpec((E, Hp), lambda i: (0, 0)),       # full W1
                    pl.BlockSpec((1, Hp), lambda i: (0, 0)),       # b1
                    pl.BlockSpec((Hp, E), lambda i: (0, 0)),       # full W2
                    pl.BlockSpec((1, E), lambda i: (0, 0)),        # b2
                ],
                out_specs=pl.BlockSpec((tm_eff, E), lambda i: (i, 0)),
            ),
            compiler_params=pltpu.CompilerParams(
                dimension_semantics=("parallel",),
                vmem_limit_bytes=vmem_limit,
            ),
            cost_estimate=cost,
        )(x2d, w1c, b1_2d, w2c, b2_2d)
    else:
        n_h_tiles = Hp // th_eff
        cost = pl.CostEstimate(
            flops=flops, transcendentals=0,
            bytes_accessed=(Mp * E * itemsize + Mp * E * out_itemsize
                            + n_row_tiles * 2 * E * Hp * itemsize))
        out2d = pl.pallas_call(
            _ffn_stream_kernel,
            out_shape=jax.ShapeDtypeStruct((Mp, E), out_dtype),
            grid_spec=pltpu.PrefetchScalarGridSpec(
                num_scalar_prefetch=0,
                grid=(n_row_tiles, n_h_tiles),
                in_specs=[
                    pl.BlockSpec((tm_eff, E), lambda i, h: (i, 0)),   # x row tile
                    pl.BlockSpec((E, th_eff), lambda i, h: (0, h)),   # W1 slice
                    pl.BlockSpec((1, th_eff), lambda i, h: (0, h)),   # b1 slice
                    pl.BlockSpec((th_eff, E), lambda i, h: (h, 0)),   # W2 slice
                    pl.BlockSpec((1, E), lambda i, h: (0, 0)),        # b2
                ],
                out_specs=pl.BlockSpec((tm_eff, E), lambda i, h: (i, 0)),
                scratch_shapes=[pltpu.VMEM((tm_eff, E), jnp.float32)],
            ),
            compiler_params=pltpu.CompilerParams(
                dimension_semantics=("parallel", "arbitrary"),
                vmem_limit_bytes=vmem_limit,
            ),
            cost_estimate=cost,
        )(x2d, w1c, b1_2d, w2c, b2_2d)

    return out2d[:M].reshape(B, S, E)


def _reference(x, w1, b1, w2, b2):
    h = jnp.maximum(x @ w1 + b1, 0.0)
    return h @ w2 + b2


if __name__ == "__main__":
    # Small shapes consistent with the module: args.embedding_dim, args.ff_hidden_dim
    batch, seq = 2, 16
    embedding_dim, ff_hidden_dim = 128, 256

    key = jax.random.PRNGKey(0)
    kx, kw1, kb1, kw2, kb2 = jax.random.split(key, 5)

    x = jax.random.normal(kx, (batch, seq, embedding_dim), dtype=jnp.float32)
    # Deterministic init mimicking nn.Linear default scale.
    w1 = jax.random.uniform(kw1, (embedding_dim, ff_hidden_dim), jnp.float32,
                            -1.0, 1.0) / jnp.sqrt(embedding_dim)
    b1 = jax.random.uniform(kb1, (ff_hidden_dim,), jnp.float32,
                            -1.0, 1.0) / jnp.sqrt(embedding_dim)
    w2 = jax.random.uniform(kw2, (ff_hidden_dim, embedding_dim), jnp.float32,
                            -1.0, 1.0) / jnp.sqrt(ff_hidden_dim)
    b2 = jax.random.uniform(kb2, (embedding_dim,), jnp.float32,
                            -1.0, 1.0) / jnp.sqrt(ff_hidden_dim)

    ref = _reference(x, w1, b1, w2, b2)

    # Default perf path: bf16 matmuls, weight-resident fast path (auto).
    out_bf16 = feed_forward_module(x, w1, b1, w2, b2)
    out_bf16 = jax.block_until_ready(out_bf16)
    assert out_bf16.shape == (batch, seq, embedding_dim)
    assert jnp.allclose(out_bf16, ref, atol=5e-2, rtol=5e-2), \
        "bf16 resident path mismatch vs reference"

    # f32 compute + forced streaming path (exercises the accumulator grid).
    out_f32 = feed_forward_module(x, w1, b1, w2, b2, compute_dtype=jnp.float32,
                                  th=128, weight_resident=False)
    out_f32 = jax.block_until_ready(out_f32)
    assert out_f32.shape == (batch, seq, embedding_dim)
    assert jnp.allclose(out_f32, ref, atol=1e-4, rtol=1e-4), \
        "f32 streaming path mismatch vs reference"

    print("KERNEL_OK")
</pallas_src>

<mosaic_0001>
module attributes {stable_mosaic.version = 11 : i64} {
  func.func @_ffn_resident_kernel(%arg0: i32, %arg1: memref<32x128xbf16, #tpu.memory_space<vmem>>, %arg2: memref<128x256xbf16, #tpu.memory_space<vmem>>, %arg3: memref<1x256xf32, #tpu.memory_space<vmem>>, %arg4: memref<256x128xbf16, #tpu.memory_space<vmem>>, %arg5: memref<1x128xf32, #tpu.memory_space<vmem>>, %arg6: memref<32x128xf32, #tpu.memory_space<vmem>>) attributes {dimension_semantics = [#tpu.dimension_semantics<parallel>], iteration_bounds = array<i64: 1>, scalar_prefetch = 0 : i64, scratch_operands = 0 : i64, tpu.core_type = #tpu.core_type<tc>, window_params = [{transform_indices = @transform_0, window_bounds = array<i64: 32, 128>}, {pipeline_mode = #tpu.pipeline_mode<synchronous>, transform_indices = @transform_1, window_bounds = array<i64: 128, 256>}, {pipeline_mode = #tpu.pipeline_mode<synchronous>, transform_indices = @transform_2, window_bounds = array<i64: 1, 256>}, {pipeline_mode = #tpu.pipeline_mode<synchronous>, transform_indices = @transform_3, window_bounds = array<i64: 256, 128>}, {pipeline_mode = #tpu.pipeline_mode<synchronous>, transform_indices = @transform_4, window_bounds = array<i64: 1, 128>}, {transform_indices = @transform_5, window_bounds = array<i64: 32, 128>}]} {
    %c0 = arith.constant 0 : index
    %c0_0 = arith.constant 0 : index
    %0 = vector.load %arg1[%c0, %c0_0] : memref<32x128xbf16, #tpu.memory_space<vmem>>, vector<32x128xbf16>
    %c0_1 = arith.constant 0 : index
    %c0_2 = arith.constant 0 : index
    %1 = vector.load %arg2[%c0_1, %c0_2] : memref<128x256xbf16, #tpu.memory_space<vmem>>, vector<128x256xbf16>
    %cst = arith.constant dense<0.000000e+00> : vector<32x256xf32>
    %2 = tpu.matmul %0, %1, %cst {dimension_numbers = #tpu.dot_dimension_numbers<[1], [0], [0], [1], [0, 0, 1, 1], [], []>} : vector<32x128xbf16>, vector<128x256xbf16>, vector<32x256xf32> -> vector<32x256xf32>
    %c0_3 = arith.constant 0 : index
    %c0_4 = arith.constant 0 : index
    %3 = vector.load %arg3[%c0_3, %c0_4] : memref<1x256xf32, #tpu.memory_space<vmem>>, vector<1x256xf32>
    %4 = vector.broadcast %3 : vector<1x256xf32> to vector<32x256xf32>
    %5 = arith.addf %2, %4 : vector<32x256xf32>
    %cst_5 = arith.constant 0.000000e+00 : f32
    %6 = vector.broadcast %cst_5 : f32 to vector<32x256xf32>
    %7 = arith.maximumf %5, %6 : vector<32x256xf32>
    %8 = arith.truncf %7 : vector<32x256xf32> to vector<32x256xbf16>
    %c0_6 = arith.constant 0 : index
    %c0_7 = arith.constant 0 : index
    %9 = vector.load %arg4[%c0_6, %c0_7] : memref<256x128xbf16, #tpu.memory_space<vmem>>, vector<256x128xbf16>
    %cst_8 = arith.constant dense<0.000000e+00> : vector<32x128xf32>
    %10 = tpu.matmul %8, %9, %cst_8 {dimension_numbers = #tpu.dot_dimension_numbers<[1], [0], [0], [1], [0, 0, 1, 1], [], []>} : vector<32x256xbf16>, vector<256x128xbf16>, vector<32x128xf32> -> vector<32x128xf32>
    %c0_9 = arith.constant 0 : index
    %c0_10 = arith.constant 0 : index
    %11 = vector.load %arg5[%c0_9, %c0_10] : memref<1x128xf32, #tpu.memory_space<vmem>>, vector<1x128xf32>
    %12 = vector.broadcast %11 : vector<1x128xf32> to vector<32x128xf32>
    %13 = arith.addf %10, %12 : vector<32x128xf32>
    %c0_11 = arith.constant 0 : index
    %c0_12 = arith.constant 0 : index
    %14 = vector.load %arg6[%c0_11, %c0_12] : memref<32x128xf32, #tpu.memory_space<vmem>>, vector<32x128xf32>
    tpu.vector_store %arg6[%c0_11, %c0_12], %13 {strides = array<i32>} : memref<32x128xf32, #tpu.memory_space<vmem>>, vector<32x128xf32>,
    return
  }
  func.func @transform_0(%arg0: i32) -> (i32, i32) {
    %c0_i32 = arith.constant 0 : i32
    %c0_i32_0 = arith.constant 0 : i32
    return %arg0, %c0_i32 : i32, i32
  }
  func.func @transform_1(%arg0: i32) -> (i32, i32) {
    %c0_i32 = arith.constant 0 : i32
    %c0_i32_0 = arith.constant 0 : i32
    %c0_i32_1 = arith.constant 0 : i32
    return %c0_i32, %c0_i32_0 : i32, i32
  }
  func.func @transform_2(%arg0: i32) -> (i32, i32) {
    %c0_i32 = arith.constant 0 : i32
    %c0_i32_0 = arith.constant 0 : i32
    %c0_i32_1 = arith.constant 0 : i32
    return %c0_i32, %c0_i32_0 : i32, i32
  }
  func.func @transform_3(%arg0: i32) -> (i32, i32) {
    %c0_i32 = arith.constant 0 : i32
    %c0_i32_0 = arith.constant 0 : i32
    %c0_i32_1 = arith.constant 0 : i32
    return %c0_i32, %c0_i32_0 : i32, i32
  }
  func.func @transform_4(%arg0: i32) -> (i32, i32) {
    %c0_i32 = arith.constant 0 : i32
    %c0_i32_0 = arith.constant 0 : i32
    %c0_i32_1 = arith.constant 0 : i32
    return %c0_i32, %c0_i32_0 : i32, i32
  }
  func.func @transform_5(%arg0: i32) -> (i32, i32) {
    %c0_i32 = arith.constant 0 : i32
    %c0_i32_0 = arith.constant 0 : i32
    return %arg0, %c0_i32 : i32, i32
  }
}

</mosaic_0001>

<bundles_post_ra>
// kernel: feed_forward_module.1
= control target key start
LH: loop header
LB: loop body
LE: loop exit
PB: predicated region body
PF: predicated region fallthrough
CT: control target
= control target key end

     0   :  { %v548_v2 = vmov 0   ;;  %s702_s0 = inlined_call_operand.vmem [shape: bf16[32,128], index: 0, kind: input, shape index: {}]   ;;  %s703_s1 = inlined_call_operand.vmem [shape: bf16[128,256], index: 1, kind: input, shape index: {}]   ;;  %s704_s2 = inlined_call_operand.vmem [shape: f32[1,256], index: 2, kind: input, shape index: {}]   ;;  %s705_s3 = inlined_call_operand.vmem [shape: bf16[256,128], index: 3, kind: input, shape index: {}]   ;;  %s706_s4 = inlined_call_operand.vmem [shape: f32[1,128], index: 4, kind: input, shape index: {}]   ;;  %s707_s5 = inlined_call_operand.hbm [shape: f32[32,128], index: 5, kind: output, shape index: {}]  }
   0x1   :  { %v482_v0 = vld [vmem:[%s703_s1 + $0x4] ss:$8 sps:$4 sm:$0xff]   ;;  %v484_v1 = vld [vmem:[%s703_s1] ss:$8 sps:$4 sm:$0xff]   ;;  %178 = vmatprep.mubr.bf16.mxu0 %v548_v2  ;;  %v485_v3 = vld [vmem:[%s703_s1 + $0x14] ss:$8 sps:$4 sm:$0xff]  }
   0x2   :  { %146 = vmatprep.subr.bf16.mxu0 %v482_v0  ;;  %v487_v4 = vld [vmem:[%s703_s1 + $0x10] ss:$8 sps:$4 sm:$0xff]   ;;  %v488_v5 = vld [vmem:[%s703_s1 + $0x24] ss:$8 sps:$4 sm:$0xff]   ;;  %v490_v6 = vld [vmem:[%s703_s1 + $0x20] ss:$8 sps:$4 sm:$0xff]  }
   0x3   :  { %147 = vmatpush1.bf16.msra.mxu0 %v484_v1  ;;  %v491_v7 = vld [vmem:[%s703_s1 + $0x34] ss:$8 sps:$4 sm:$0xff]   ;;  %v493_v8 = vld [vmem:[%s703_s1 + $0x30] ss:$8 sps:$4 sm:$0xff]   ;;  %v494_v9 = vld [vmem:[%s703_s1 + $0x44] ss:$8 sps:$4 sm:$0xff]  }
   0x4   :  { %148 = vmatprep.subr.bf16.mxu0 %v485_v3  ;;  %v496_v10 = vld [vmem:[%s703_s1 + $0x40] ss:$8 sps:$4 sm:$0xff]   ;;  %v497_v12 = vld [vmem:[%s703_s1 + $0x54] ss:$8 sps:$4 sm:$0xff]   ;;  %v499_v17 = vld [vmem:[%s703_s1 + $0x50] ss:$8 sps:$4 sm:$0xff]  }
   0x5   :  { %v508_v11 = vld [vmem:[%s705_s3 + $0x40] sm:$0xff]   ;;  %v510_v14 = vld [vmem:[%s705_s3 + $0x48] sm:$0xff]   ;;  %v512_v16 = vld [vmem:[%s705_s3 + $0x50] sm:$0xff]  }
   0x6   :  { %v509_v13 = vld [vmem:[%s705_s3] sm:$0xff]   ;;  %450 = vmatprep.subr.bf16.mxu1 %v508_v11  ;;  %v511_v15 = vld [vmem:[%s705_s3 + $0x8] sm:$0xff]   ;;  %v513_v19 = vld [vmem:[%s705_s3 + $0x10] sm:$0xff]  }
   0x7   :  { %149 = vmatpush1.bf16.msra.mxu0 %v487_v4  ;;  %451 = vmatpush3.bf16.msra.mxu1 %v509_v13  ;;  %v500_v18 = vld [vmem:[%s703_s1 + $0x64] ss:$8 sps:$4 sm:$0xff]   ;;  %v502_v20 = vld [vmem:[%s703_s1 + $0x60] ss:$8 sps:$4 sm:$0xff]   ;;  %v514_v21 = vld [vmem:[%s705_s3 + $0x58] sm:$0xff]  }
   0x8   :  { %150 = vmatprep.subr.bf16.mxu0 %v488_v5  ;;  %452 = vmatprep.subr.bf16.mxu1 %v510_v14  ;;  %v503_v22 = vld [vmem:[%s703_s1 + $0x74] ss:$8 sps:$4 sm:$0xff]   ;;  %v516_v24 = vld [vmem:[%s705_s3 + $0x60] sm:$0xff]   ;;  %v505_v25 = vld [vmem:[%s703_s1 + $0x70] ss:$8 sps:$4 sm:$0xff]  }
   0x9   :  { %v515_v23 = vld [vmem:[%s705_s3 + $0x18] sm:$0xff]  }
   0xb   :  { %151 = vmatpush1.bf16.msra.mxu0 %v490_v6  ;;  %453 = vmatpush3.bf16.msra.mxu1 %v511_v15 }
   0xc   :  { %152 = vmatprep.subr.bf16.mxu0 %v491_v7  ;;  %454 = vmatprep.subr.bf16.mxu1 %v512_v16 }
   0xf   :  { %153 = vmatpush1.bf16.msra.mxu0 %v493_v8  ;;  %455 = vmatpush3.bf16.msra.mxu1 %v513_v19 }
  0x10   :  { %154 = vmatprep.subr.bf16.mxu0 %v494_v9  ;;  %456 = vmatprep.subr.bf16.mxu1 %v514_v21 }
  0x13   :  { %155 = vmatpush1.bf16.msra.mxu0 %v496_v10 }
  0x14   :  { %156 = vmatprep.subr.bf16.mxu0 %v497_v12 }
  0x17   :  { %157 = vmatpush1.bf16.msra.mxu0 %v499_v17 }
  0x18   :  { %158 = vmatprep.subr.bf16.mxu0 %v500_v18 }
  0x1b   :  { %159 = vmatpush1.bf16.msra.mxu0 %v502_v20 }
  0x1c   :  { %10 = vsyncpa [#allocation3], 0  ;;  %160 = vmatprep.subr.bf16.mxu0 %v503_v22  ;;  %457 = vmatpush3.bf16.msra.mxu1 %v515_v23  ;;  %v517_v26 = vld [vmem:[%s705_s3 + $0x20] sm:$0xff]   ;;  %v518_v27 = vld [vmem:[%s705_s3 + $0x68] sm:$0xff]   ;;  %v44_v35 = vlaneseq  ;;  %s549_s11 = smov [#allocation2]  }
  0x1d   :  { %458 = vmatprep.subr.bf16.mxu1 %v516_v24  ;;  %v506_v28 = vld [vmem:[%s702_s0] sm:$0xff]   ;;  %v507_v29 = vld [vmem:[%s702_s0 + $0x8] sm:$0xff]   ;;  %v520_v31 = vld [vmem:[%s705_s3 + $0x70] sm:$0xff]   ;;  %s404_s12 = sshll.u32 %s549_s11, 4  ;;  %s405_s12 = int_to_ptr.vmem [resolvable:$true] %s404_s12 }
  0x1e   :  { %v519_v30 = vld [vmem:[%s705_s3 + $0x28] sm:$0xff]   ;;  %v521_v32 = vld [vmem:[%s705_s3 + $0x30] sm:$0xff]   ;;  %v522_v33 = vld [vmem:[%s705_s3 + $0x78] sm:$0xff]   ;;  %v45_v36 = vshrl.u32 %v44_v35, 7  ;;  %p529_p1 = scmp.lt.s32.totalorder %s405_s12, %s405_s12 }
  0x1f   :  { %161 = vmatpush1.bf16.msra.mxu0 %v505_v25  ;;  %v523_v34 = vld [vmem:[%s705_s3 + $0x38] sm:$0xff]   ;;  %v42_v38 = vld [vmem:[%s704_s2] sm:$0x3] }
  0x20   :  { %459 = vmatpush3.bf16.msra.mxu1 %v517_v26  ;;  %v46_v37 = vsub.s32 0, %v45_v36  ;;  %v50_v39 = vsub.s32 1, %v45_v36  ;;  %v433_v7 = vld [vmem:[%s706_s4] ss:$0 sm:$0xff]  ;;  %s524_s4 = scalar_lea.vmem %s405_s12, 512 }
  0x21   :  { %460 = vmatprep.subr.bf16.mxu1 %v518_v27  ;;  %p525_p0 = scmp.ne.s32.totalorder %s405_s12, %s524_s4  ;;  %p530_p2 = scmp.lt.s32.totalorder %s524_s4, %s524_s4 }
  0x22   :  { %179 = vmatmul.mubr.bf16.vlgmr.msra.gmra.mrb[0].mxu0 %v506_v28  ;;  %v47_v40 = vrot.slane %v42_v38, %v46_v37  ;;  %v51_v41 = vrot.slane %v42_v38, %v50_v39 }
  0x23   :  { %188 = vmatprep.mubr.bf16.mxu0 %v548_v2  ;;  %p531_p3 = por %p530_p2, %p529_p1 }
  0x24   :  { %461 = vmatpush3.bf16.msra.mxu1 %v519_v30 }
  0x25   :  { %462 = vmatprep.subr.bf16.mxu1 %v520_v31  ;;  %p532_p4 = pnand %p531_p3, %p525_p0 }
  0x28   :  { %463 = vmatpush3.bf16.msra.mxu1 %v521_v32 }
  0x29   :  { %464 = vmatprep.subr.bf16.mxu1 %v522_v33 }
  0x2a   :  { %189 = vmatmul.mubr.bf16.gmra.mrb[4].mxu0 %v507_v29 }
  0x2c   :  { %465 = vmatpush3.bf16.msra.mxu1 %v523_v34 }
  0xf5   :  { %v180_v42 = vpop.f32.mrb[0].mxu0 }
  0xf6   :  { %v181_v43 = vadd.f32 %v180_v42, %v47_v40  ;;  %v182_v44 = vpop.f32.mrb[1].mxu0 }
  0xf7   :  { %v183_v45 = vadd.f32 %v182_v44, %v51_v41  ;;  %v184_v46 = vpop.f32.mrb[2].mxu0 }
  0xf8   :  { %v185_v47 = vadd.f32 %v184_v46, %v47_v40  ;;  %v186_v48 = vpop.f32.mrb[3].mxu0  ;;  %v199_v50 = vmax.f32 %v181_v43, 0.0 }
  0xf9   :  { %v187_v49 = vadd.f32 %v186_v48, %v51_v41  ;;  %v200_v52 = vmax.f32 %v183_v45, 0.0 }
  0xfa   :  { %v201_v51 = vmax.f32 %v185_v47, 0.0 }
  0xfb   :  { %v202_v53 = vmax.f32 %v187_v49, 0.0 }
  0xfc   :  { %v207_v54 = vpack.c.bf16 %v201_v51, %v199_v50 }
  0xfd   :  { %v190_v55 = vpop.f32.mrb[4].mxu0  ;;  %v208_v56 = vpack.c.bf16 %v202_v53, %v200_v52 }
  0xfe   :  { %v191_v57 = vadd.f32 %v190_v55, %v47_v40  ;;  %v192_v58 = vpop.f32.mrb[5].mxu0 }
  0xff   :  { %v193_v59 = vadd.f32 %v192_v58, %v51_v41  ;;  %v194_v60 = vpop.f32.mrb[6].mxu0  ;;  %378 = vmatprep.mubr.bf16.mxu1 %v208_v56 }
 0x100   :  { %v195_v61 = vadd.f32 %v194_v60, %v47_v40  ;;  %v196_v62 = vpop.f32.mrb[7].mxu0  ;;  %379 = vmatmul.mubr.bf16.vlgmr.msra.gmra.mrb[0].mxu1 %v207_v54  ;;  %v203_v0 = vmax.f32 %v191_v57, 0.0 }
 0x101   :  { %v197_v63 = vadd.f32 %v196_v62, %v51_v41  ;;  %v204_v2 = vmax.f32 %v193_v59, 0.0 }
 0x102   :  { %v205_v1 = vmax.f32 %v195_v61, 0.0 }
 0x103   :  { %v206_v3 = vmax.f32 %v197_v63, 0.0 }
 0x104   :  { %v209_v4 = vpack.c.bf16 %v205_v1, %v203_v0 }
 0x105   :  { %v210_v5 = vpack.c.bf16 %v206_v3, %v204_v2 }
 0x107   :  { %386 = vmatprep.mubr.bf16.mxu1 %v210_v5 }
 0x108   :  { %387 = vmatmul.mubr.bf16.gmra.mrb[4].mxu1 %v209_v4 }
 0x1d3   :  { %v466_v6 = vpop.f32.mrb[0].mxu1 }
 0x1d4   :  { %v467_v8 = vpop.f32.mrb[1].mxu1 }
 0x1d5   :  { %v468_v9 = vadd.f32 %v467_v8, %v466_v6  ;;  %v469_v10 = vpop.f32.mrb[2].mxu1 }
 0x1d6   :  { %v470_v11 = vpop.f32.mrb[3].mxu1 }
 0x1d7   :  { %v381_v12 = vadd.f32 %v468_v9, %v433_v7  ;;  %v471_v13 = vadd.f32 %v470_v11, %v469_v10 }
 0x1d9   :  { %395 = vst [vmem:[#allocation2] sm:$0xff] %v381_v12  ;;  %v384_v14 = vadd.f32 %v471_v13, %v433_v7 }
 0x1db   :  { %396 = vst [vmem:[#allocation2 + $0x8] sm:$0xff] %v384_v14  ;;  %v472_v15 = vpop.f32.mrb[4].mxu1 }
 0x1dc   :  { %v473_v16 = vpop.f32.mrb[5].mxu1 }
 0x1dd   :  { %v474_v17 = vadd.f32 %v473_v16, %v472_v15  ;;  %v475_v18 = vpop.f32.mrb[6].mxu1 }
 0x1de   :  { %v476_v19 = vpop.f32.mrb[7].mxu1 }
 0x1df   :  { %v389_v20 = vadd.f32 %v474_v17, %v433_v7  ;;  %v477_v21 = vadd.f32 %v476_v19, %v475_v18 }
 0x1e1   :  { %397 = vst [vmem:[#allocation2 + $0x10] sm:$0xff] %v389_v20  ;;  %v392_v22 = vadd.f32 %v477_v21, %v433_v7 }
 0x1e3   :  { %398 = vst [vmem:[#allocation2 + $0x18] sm:$0xff] %v392_v22 }
 0x1e4   :  { %535 = shalt.err (!%p532_p4)
}
 0x1e5   :  { %s536_s15 = scalar_lea.hbm %s707_s5, 512 }
 0x1e6   :  { %p537_p5 = scmp.ne.s32.totalorder %s707_s5, %s536_s15  ;;  %p540_p6 = scmp.lt.u32.totalorder %s536_s15, %s707_s5 }
 0x1e8   :  { %p542_p7 = pnand %p540_p6, %p537_p5 }
 0x1ea   :  { %545 = shalt.err (!%p542_p7)
}
 0x1eb   :  { %s550_s20 = smov 128   ;;  %s551_s21 = smov 8  }
 0x1ec   :  { %410 = dma.vmem_to_hbm [thread:$0]  %s405_s12, 512, %s707_s5, [#allocation3], %s550_s20, %s550_s20, %s551_s21  }
 0x1ed   :  { %546 = dma.done.wait [#allocation3], 512  }
 0x1ee   :  { %547 = vsyncadd [#allocation3], 4294966784 }
 0x1ef   :  { %414 = vsyncpa [#allocation3], 1 }

</bundles_post_ra>
